<compile_context>
chip_gen: v6e
topology: v6e:2x2x1
jax: 0.10.0
libtpu: 0.0.40
codegen_flags: <defaults>
</compile_context>

<pallas_src>
import jax
import jax.numpy as jnp
from jax import lax
from jax.experimental import pallas as pl
from jax.experimental.pallas import tpu as pltpu

OUT_FEATURES = 8
IN_FEATURES = 128


def custom_init_kernel(bits_ref, w_ref):
    # bits_ref: VMEM (TM, IN) int32 raw random bits
    # w_ref:    VMEM (TM, IN) float32 initialized weight tile
    bits = bits_ref[...]
    # Use the top 24 bits -> exact float32 uniform in [0, 1).
    u24 = lax.shift_right_logical(bits, 8)            # int32, in [0, 2^24)
    u01 = u24.astype(jnp.float32) * jnp.float32(1.0 / (1 << 24))
    # nn.init.uniform_(w, a=-10, b=10)
    w = u01 * jnp.float32(20.0) - jnp.float32(10.0)
    # m.weight.data *= torch.abs(m.weight.data) >= 5   (single VPU select)
    w_ref[...] = jnp.where(jnp.abs(w) >= jnp.float32(5.0), w, jnp.float32(0.0))


def custom_init_linear(key, out_features=OUT_FEATURES, in_features=IN_FEATURES):
    """Applies CustomInit.forward semantics to an nn.Linear(in, out)'s params."""
    # Portable bit source (pltpu.prng_* has no interpret/CPU lowering); bit
    # pattern is preserved through the uint32 -> int32 view.
    bits = jax.random.bits(key, (out_features, in_features),
                           dtype=jnp.uint32).astype(jnp.int32)

    # Lane-dense tiling: last dim is a multiple of 128 per block; rows tiled.
    tm = out_features if out_features <= 256 else 256
    assert out_features % tm == 0 and in_features % 128 == 0
    grid = (out_features // tm,)

    w = pl.pallas_call(
        custom_init_kernel,
        out_shape=jax.ShapeDtypeStruct((out_features, in_features), jnp.float32),
        grid=grid,
        in_specs=[pl.BlockSpec((tm, in_features), lambda i: (i, 0))],
        out_specs=pl.BlockSpec((tm, in_features), lambda i: (i, 0)),
        compiler_params=pltpu.CompilerParams(
            dimension_semantics=("parallel",)),
    )(bits)

    # nn.init.zeros_(m.bias): returned from the wrapper (XLA zero-fill) instead
    # of a sub-lane-width in-kernel store.
    b = jnp.zeros((out_features,), jnp.float32)
    return w, b


if __name__ == "__main__":
    key = jax.random.PRNGKey(0)

    # "m" is an nn.Linear(IN_FEATURES, OUT_FEATURES); initialize its params.
    weight, bias = custom_init_linear(key)
    weight = jax.block_until_ready(weight)
    bias = jax.block_until_ready(bias)

    assert weight.shape == (OUT_FEATURES, IN_FEATURES)
    assert bias.shape == (OUT_FEATURES,)

    import numpy as np

    w_np = np.asarray(weight)
    b_np = np.asarray(bias)
    # Every nonzero weight must have magnitude in [5, 10); all others exactly 0.
    nz = w_np[w_np != 0.0]
    assert np.all(np.abs(nz) >= 5.0 - 1e-6)
    assert np.all(np.abs(w_np) <= 10.0 + 1e-6)
    # Zeroed entries are +0.0 (jnp.where select, no -0.0 artifact).
    zeros = w_np[w_np == 0.0]
    assert np.all(np.signbit(zeros) == False)  # noqa: E712
    assert np.all(b_np == 0.0)

    print("KERNEL_OK")
</pallas_src>

<mosaic_0001>
module attributes {stable_mosaic.version = 11 : i64} {
  func.func @custom_init_kernel(%arg0: i32, %arg1: memref<8x128xi32, #tpu.memory_space<vmem>>, %arg2: memref<8x128xf32, #tpu.memory_space<vmem>>) attributes {dimension_semantics = [#tpu.dimension_semantics<parallel>], iteration_bounds = array<i64: 1>, scalar_prefetch = 0 : i64, scratch_operands = 0 : i64, tpu.core_type = #tpu.core_type<tc>, window_params = [{transform_indices = @transform_0, window_bounds = array<i64: 8, 128>}, {transform_indices = @transform_1, window_bounds = array<i64: 8, 128>}]} {
    %c0 = arith.constant 0 : index
    %c0_0 = arith.constant 0 : index
    %0 = vector.load %arg1[%c0, %c0_0] : memref<8x128xi32, #tpu.memory_space<vmem>>, vector<8x128xi32>
    %c8_i32 = arith.constant 8 : i32
    %1 = vector.broadcast %c8_i32 : i32 to vector<8x128xi32>
    %2 = arith.shrui %0, %1 : vector<8x128xi32>
    %3 = arith.sitofp %2 : vector<8x128xi32> to vector<8x128xf32>
    %cst = arith.constant 5.96046448E-8 : f32
    %4 = vector.broadcast %cst : f32 to vector<8x128xf32>
    %5 = arith.mulf %3, %4 : vector<8x128xf32>
    %cst_1 = arith.constant 2.000000e+01 : f32
    %6 = vector.broadcast %cst_1 : f32 to vector<8x128xf32>
    %7 = arith.mulf %5, %6 : vector<8x128xf32>
    %cst_2 = arith.constant 1.000000e+01 : f32
    %8 = vector.broadcast %cst_2 : f32 to vector<8x128xf32>
    %9 = arith.subf %7, %8 : vector<8x128xf32>
    %10 = math.absf %9 : vector<8x128xf32>
    %cst_3 = arith.constant 5.000000e+00 : f32
    %11 = vector.broadcast %cst_3 : f32 to vector<8x128xf32>
    %12 = arith.cmpf oge, %10, %11 : vector<8x128xf32>
    %cst_4 = arith.constant 0.000000e+00 : f32
    %13 = vector.broadcast %cst_4 : f32 to vector<8x128xf32>
    %14 = arith.select %12, %9, %13 : vector<8x128xi1>, vector<8x128xf32>
    %c0_5 = arith.constant 0 : index
    %c0_6 = arith.constant 0 : index
    %15 = vector.load %arg2[%c0_5, %c0_6] : memref<8x128xf32, #tpu.memory_space<vmem>>, vector<8x128xf32>
    tpu.vector_store %arg2[%c0_5, %c0_6], %14 {strides = array<i32>} : memref<8x128xf32, #tpu.memory_space<vmem>>, vector<8x128xf32>,
    return
  }
  func.func @transform_0(%arg0: i32) -> (i32, i32) {
    %c0_i32 = arith.constant 0 : i32
    %c0_i32_0 = arith.constant 0 : i32
    return %arg0, %c0_i32 : i32, i32
  }
  func.func @transform_1(%arg0: i32) -> (i32, i32) {
    %c0_i32 = arith.constant 0 : i32
    %c0_i32_0 = arith.constant 0 : i32
    return %arg0, %c0_i32 : i32, i32
  }
}

</mosaic_0001>

<bundles_post_ra>
// kernel: tpu_custom_call.1
= control target key start
LH: loop header
LB: loop body
LE: loop exit
PB: predicated region body
PF: predicated region fallthrough
CT: control target
= control target key end

     0   :  { %6 = vsyncpa [#allocation3], 0  ;;  %s111_s0 = inlined_call_operand.hbm [shape: s32[8,128], index: 0, kind: input, shape index: {}]   ;;  %s112_s1 = inlined_call_operand.hbm [shape: f32[8,128], index: 1, kind: output, shape index: {}]  }
   0x1   :  { %7 = vsyncpa [#allocation4], 0  ;;  %s93_s6 = smov [#allocation2]  }
   0x2   :  { %s14_s7 = sshll.u32 %s93_s6, 4  ;;  %s15_s7 = int_to_ptr.vmem [resolvable:$true] %s14_s7 }
   0x3   :  { %s57_s8 = scalar_lea.vmem %s15_s7, 128  ;;  %p62_p1 = scmp.lt.s32.totalorder %s15_s7, %s15_s7 }
   0x4   :  { %p58_p0 = scmp.ne.s32.totalorder %s15_s7, %s57_s8  ;;  %p63_p2 = scmp.lt.s32.totalorder %s57_s8, %s57_s8 }
   0x6   :  { %p64_p3 = por %p63_p2, %p62_p1 }
   0x8   :  { %p65_p4 = pnand %p64_p3, %p58_p0 }
   0xa   :  { %68 = shalt.err (!%p65_p4)
}
   0xb   :  { %17 = dma.hbm_to_vmem [thread:$0]  %s111_s0, 128, %s15_s7, [#allocation3]  }
   0xc   :  { %89 = dma.done.wait [#allocation3], 128  }
   0xd   :  { %90 = vsyncadd [#allocation3], 4294967168  ;;  %v21_v0 = vld [vmem:[#allocation2] sm:$0xff]  ;;  %s94_s11 = smov [#allocation5]  }
   0xe   :  { %v22_v1 = vshrl.u32 %v21_v0, 8  ;;  %s37_s12 = sshll.u32 %s94_s11, 4  ;;  %s38_s12 = int_to_ptr.vmem [resolvable:$true] %s37_s12 }
   0xf   :  { %s69_s13 = scalar_lea.vmem %s38_s12, 128  ;;  %p74_p6 = scmp.lt.s32.totalorder %s38_s12, %s38_s12 }
  0x10   :  { %v23_v2 = vcvt.s32.f32 %v22_v1  ;;  %p70_p5 = scmp.ne.s32.totalorder %s38_s12, %s69_s13  ;;  %p75_p7 = scmp.lt.s32.totalorder %s69_s13, %s69_s13 }
  0x12   :  { %v24_v3 = vmul.f32 5.9604645e-08, %v23_v2  ;;  %p76_p8 = por %p75_p7, %p74_p6 }
  0x14   :  { %v25_v4 = vmul.f32 20.0, %v24_v3  ;;  %p77_p9 = pnand %p76_p8, %p70_p5 }
  0x16   :  { %v46_v5 = vadd.f32 -10.0, %v25_v4 }
  0x18   :  { %v27_v6 = vand.u32 2147483647, %v46_v5 }
  0x1a   :  { %vm28_vm0 = vcmp.ge.f32.partialorder %v27_v6, 5.0 }
  0x1b   :  { %v29_v7 = vsel %vm28_vm0, %v46_v5, 0.0 }
  0x1c   :  { %30 = vst [vmem:[#allocation5] sm:$0xff] %v29_v7 }
  0x1d   :  { %80 = shalt.err (!%p77_p9)
}
  0x1e   :  { %40 = dma.vmem_to_hbm [thread:$0]  %s38_s12, 128, %s112_s1, [#allocation4]  }
  0x1f   :  { %91 = dma.done.wait [#allocation4], 128  }
  0x20   :  { %92 = vsyncadd [#allocation4], 4294967168 }
  0x21   :  { %44 = vsyncpa [#allocation3], 1 }
  0x22   :  { %45 = vsyncpa [#allocation4], 1 }

</bundles_post_ra>
